<compile_context>
chip_gen: v7x
topology: tpu7x:2x2x1
jax: 0.10.0
libtpu: 0.0.40
codegen_flags: <defaults>
</compile_context>

<pallas_src>
import jax
import jax.numpy as jnp
from jax import lax
from jax.experimental import pallas as pl
from jax.experimental.pallas import tpu as pltpu

RESIDUAL = False  # matches BlackSSM default


def black_ssm_kernel(x0_ref, ud_ref,
                     wx_ref, wud_ref, bxud_ref,
                     we_ref, be_ref, wy_ref, by_ref,
                     xpred_ref, ypred_ref, fe_out_ref,
                     g_scr):
    """Whole-trajectory BlackSSM forward in a single invocation.

    The recurrence runs as an unrolled fori_loop with x carried in vregs; the
    input-driven term and the observation map are batched GEMMs outside it.
    """
    B = x0_ref.shape[0]
    nsteps = ud_ref.shape[0] // B

    # Hoisted input-driven term, one batched GEMM over all timesteps:
    #   g[t*B + b, :] = U[t, b] @ Wu + D[t, b] @ Wd + b_xud
    g_scr[...] = (jnp.dot(ud_ref[...], wud_ref[...],
                          preferred_element_type=jnp.float32)
                  + bxud_ref[...])

    def step(t, x_prev):
        row = pl.multiple_of(t * B, B)          # sublane-aligned dynamic start
        g_t = g_scr[pl.ds(row, B), :]           # (B, nx)

        # x_lin = fxud(cat([x, u, d]))  (split matmul; u/d part pre-hoisted)
        x_lin = jnp.dot(x_prev, wx_ref[...],
                        preferred_element_type=jnp.float32) + g_t

        # fe = fe(x_lin); x = xoe(x_lin, fe) with xoe = torch.add
        fe = jnp.dot(x_lin, we_ref[...],
                     preferred_element_type=jnp.float32) + be_ref[...]
        x_next = x_lin + fe
        if RESIDUAL:
            x_next = x_next + x_prev

        xpred_ref[pl.ds(row, B), :] = x_next
        fe_out_ref[pl.ds(row, B), :] = fe
        return x_next

    _ = lax.fori_loop(0, nsteps, step, x0_ref[...], unroll=True)

    # Hoisted observation map: one GEMM over the full stored state trajectory.
    ypred_ref[...] = (jnp.dot(xpred_ref[...], wy_ref[...],
                              preferred_element_type=jnp.float32)
                      + by_ref[...])


def black_ssm_forward(x0, U, D, params, name="black_ssm"):
    """Pallas-backed equivalent of BlackSSM.forward.

    data dict -> explicit args: x0 (B, nx), U = data['Uf'] (nsteps, B, nu),
    D = data['Df'] (nsteps, B, nd). Returns the same output dict keys.
    """
    wx, wu, wd, bxud, we, be, wy, by = params
    nsteps, B, nu = U.shape
    nd = D.shape[-1]
    nx = x0.shape[-1]
    ny = wy.shape[-1]
    TB = nsteps * B

    # Wrapper-side packing (free XLA reshapes/concats):
    #   [U | D] flattened over (time, batch), and Wu/Wd stacked to one matrix.
    ud = jnp.concatenate([U.reshape(TB, nu), D.reshape(TB, nd)], axis=1)
    wud = jnp.concatenate([wu, wd], axis=0)                     # (nu+nd, nx)

    full2d = lambda r, c: pl.BlockSpec((r, c), lambda i: (0, 0))

    flops = (2 * TB * (nu + nd) * nx            # hoisted g GEMM
             + nsteps * 2 * (2 * B * nx * nx)   # 2 small dots per step
             + 2 * TB * nx * ny)                # hoisted Y GEMM
    bytes_accessed = 4 * int(x0.size + ud.size + wx.size + wud.size
                             + bxud.size + we.size + be.size + wy.size
                             + by.size + TB * (2 * nx + ny))

    X_flat, Y_flat, FE_flat = pl.pallas_call(
        black_ssm_kernel,
        out_shape=(jax.ShapeDtypeStruct((TB, nx), jnp.float32),
                   jax.ShapeDtypeStruct((TB, ny), jnp.float32),
                   jax.ShapeDtypeStruct((TB, nx), jnp.float32)),
        grid_spec=pltpu.PrefetchScalarGridSpec(
            num_scalar_prefetch=0,
            grid=(1,),
            in_specs=[full2d(B, nx),          # x0
                      full2d(TB, nu + nd),    # [U | D] flattened over time*batch
                      full2d(nx, nx),         # W_x   (fxud, state slice)
                      full2d(nu + nd, nx),    # W_ud  (fxud, input+disturbance)
                      full2d(1, nx),          # b_xud
                      full2d(nx, nx),         # W_e   (fe)
                      full2d(1, nx),          # b_e
                      full2d(nx, ny),         # W_y   (fy)
                      full2d(1, ny)],         # b_y
            out_specs=[full2d(TB, nx), full2d(TB, ny), full2d(TB, nx)],
            scratch_shapes=[pltpu.VMEM((TB, nx), jnp.float32)]),  # g buffer
        compiler_params=pltpu.CompilerParams(
            dimension_semantics=("arbitrary",)),   # serial recurrence inside
        cost_estimate=pl.CostEstimate(flops=flops, transcendentals=0,
                                      bytes_accessed=bytes_accessed),
    )(x0, ud, wx, wud, bxud, we, be, wy, by)

    # reg_error: no child module defines reg_error() -> sum([]) == 0
    reg_error = jnp.zeros((), jnp.float32)
    return {f"X_pred_{name}": X_flat.reshape(nsteps, B, nx),
            f"Y_pred_{name}": Y_flat.reshape(nsteps, B, ny),
            f"fE_{name}": FE_flat.reshape(nsteps, B, nx),
            f"reg_error_{name}": reg_error}


def black_ssm_reference(x0, U, D, params):
    """Plain-JAX replica of the PyTorch forward loop (for validation)."""
    wx, wu, wd, bxud, we, be, wy, by = params
    w_xud = jnp.concatenate([wx, wu, wd], axis=0)  # (nx+nu+nd, nx)
    x = x0
    Xs, Ys, FEs = [], [], []
    for i in range(U.shape[0]):
        x_prev = x
        xc = jnp.concatenate([x, U[i], D[i]], axis=1)
        x = xc @ w_xud + bxud
        fe = x @ we + be
        x = x + fe
        if RESIDUAL:
            x = x + x_prev
        y = x @ wy + by
        Xs.append(x); Ys.append(y); FEs.append(fe)
    return jnp.stack(Xs), jnp.stack(Ys), jnp.stack(FEs)


if __name__ == "__main__":
    # Small, deterministic problem sizes.
    nsteps, B = 8, 8
    nx, nu, nd, ny = 32, 16, 16, 8

    key = jax.random.PRNGKey(0)
    ks = jax.random.split(key, 12)
    scale = 0.1

    # Parameters (stored (in_features, out_features); biases as (1, feat)).
    wx = scale * jax.random.normal(ks[0], (nx, nx), jnp.float32)
    wu = scale * jax.random.normal(ks[1], (nu, nx), jnp.float32)
    wd = scale * jax.random.normal(ks[2], (nd, nx), jnp.float32)
    bxud = scale * jax.random.normal(ks[3], (1, nx), jnp.float32)
    we = scale * jax.random.normal(ks[4], (nx, nx), jnp.float32)
    be = scale * jax.random.normal(ks[5], (1, nx), jnp.float32)
    wy = scale * jax.random.normal(ks[6], (nx, ny), jnp.float32)
    by = scale * jax.random.normal(ks[7], (1, ny), jnp.float32)
    params = (wx, wu, wd, bxud, we, be, wy, by)

    # Inputs (data['x0'], data['Yf'] only determines nsteps, data['Uf'], data['Df']).
    x0 = jax.random.normal(ks[8], (B, nx), jnp.float32)
    U = jax.random.normal(ks[9], (nsteps, B, nu), jnp.float32)
    D = jax.random.normal(ks[10], (nsteps, B, nd), jnp.float32)

    out = black_ssm_forward(x0, U, D, params)
    jax.block_until_ready(out)

    X_ref, Y_ref, FE_ref = black_ssm_reference(x0, U, D, params)
    assert jnp.allclose(out["X_pred_black_ssm"], X_ref, rtol=1e-4, atol=1e-4)
    assert jnp.allclose(out["Y_pred_black_ssm"], Y_ref, rtol=1e-4, atol=1e-4)
    assert jnp.allclose(out["fE_black_ssm"], FE_ref, rtol=1e-4, atol=1e-4)
    assert out["X_pred_black_ssm"].shape == (nsteps, B, nx)
    assert out["Y_pred_black_ssm"].shape == (nsteps, B, ny)
    assert out["fE_black_ssm"].shape == (nsteps, B, nx)
    assert out["reg_error_black_ssm"].shape == ()

    print("KERNEL_OK")
</pallas_src>

<mosaic_0001>
module attributes {stable_mosaic.version = 11 : i64} {
  func.func @black_ssm_kernel(%arg0: i32, %arg1: memref<8x32xf32, #tpu.memory_space<vmem>>, %arg2: memref<64x32xf32, #tpu.memory_space<vmem>>, %arg3: memref<32x32xf32, #tpu.memory_space<vmem>>, %arg4: memref<32x32xf32, #tpu.memory_space<vmem>>, %arg5: memref<1x32xf32, #tpu.memory_space<vmem>>, %arg6: memref<32x32xf32, #tpu.memory_space<vmem>>, %arg7: memref<1x32xf32, #tpu.memory_space<vmem>>, %arg8: memref<32x8xf32, #tpu.memory_space<vmem>>, %arg9: memref<1x8xf32, #tpu.memory_space<vmem>>, %arg10: memref<64x32xf32, #tpu.memory_space<vmem>>, %arg11: memref<64x8xf32, #tpu.memory_space<vmem>>, %arg12: memref<64x32xf32, #tpu.memory_space<vmem>>, %arg13: memref<64x32xf32, #tpu.memory_space<vmem>>) attributes {dimension_semantics = [#tpu.dimension_semantics<arbitrary>], iteration_bounds = array<i64: 1>, scalar_prefetch = 0 : i64, scratch_operands = 1 : i64, tpu.core_type = #tpu.core_type<tc>, window_params = [{pipeline_mode = #tpu.pipeline_mode<synchronous>, transform_indices = @transform_0, window_bounds = array<i64: 8, 32>}, {pipeline_mode = #tpu.pipeline_mode<synchronous>, transform_indices = @transform_1, window_bounds = array<i64: 64, 32>}, {pipeline_mode = #tpu.pipeline_mode<synchronous>, transform_indices = @transform_2, window_bounds = array<i64: 32, 32>}, {pipeline_mode = #tpu.pipeline_mode<synchronous>, transform_indices = @transform_3, window_bounds = array<i64: 32, 32>}, {pipeline_mode = #tpu.pipeline_mode<synchronous>, transform_indices = @transform_4, window_bounds = array<i64: 1, 32>}, {pipeline_mode = #tpu.pipeline_mode<synchronous>, transform_indices = @transform_5, window_bounds = array<i64: 32, 32>}, {pipeline_mode = #tpu.pipeline_mode<synchronous>, transform_indices = @transform_6, window_bounds = array<i64: 1, 32>}, {pipeline_mode = #tpu.pipeline_mode<synchronous>, transform_indices = @transform_7, window_bounds = array<i64: 32, 8>}, {pipeline_mode = #tpu.pipeline_mode<synchronous>, transform_indices = @transform_8, window_bounds = array<i64: 1, 8>}, {pipeline_mode = #tpu.pipeline_mode<synchronous>, transform_indices = @transform_9, window_bounds = array<i64: 64, 32>}, {pipeline_mode = #tpu.pipeline_mode<synchronous>, transform_indices = @transform_10, window_bounds = array<i64: 64, 8>}, {pipeline_mode = #tpu.pipeline_mode<synchronous>, transform_indices = @transform_11, window_bounds = array<i64: 64, 32>}]} {
    %c0 = arith.constant 0 : index
    %c0_0 = arith.constant 0 : index
    %0 = vector.load %arg2[%c0, %c0_0] : memref<64x32xf32, #tpu.memory_space<vmem>>, vector<64x32xf32>
    %c0_1 = arith.constant 0 : index
    %c0_2 = arith.constant 0 : index
    %1 = vector.load %arg4[%c0_1, %c0_2] : memref<32x32xf32, #tpu.memory_space<vmem>>, vector<32x32xf32>
    %cst = arith.constant dense<0.000000e+00> : vector<64x32xf32>
    %2 = tpu.matmul %0, %1, %cst {dimension_numbers = #tpu.dot_dimension_numbers<[1], [0], [0], [1], [0, 0, 1, 1], [], []>} : vector<64x32xf32>, vector<32x32xf32>, vector<64x32xf32> -> vector<64x32xf32>
    %c0_3 = arith.constant 0 : index
    %c0_4 = arith.constant 0 : index
    %3 = vector.load %arg5[%c0_3, %c0_4] : memref<1x32xf32, #tpu.memory_space<vmem>>, vector<1x32xf32>
    %4 = vector.broadcast %3 : vector<1x32xf32> to vector<64x32xf32>
    %5 = arith.addf %2, %4 : vector<64x32xf32>
    %c0_5 = arith.constant 0 : index
    %c0_6 = arith.constant 0 : index
    %6 = vector.load %arg13[%c0_5, %c0_6] : memref<64x32xf32, #tpu.memory_space<vmem>>, vector<64x32xf32>
    tpu.vector_store %arg13[%c0_5, %c0_6], %5 {strides = array<i32>} : memref<64x32xf32, #tpu.memory_space<vmem>>, vector<64x32xf32>,
    %c0_7 = arith.constant 0 : index
    %c0_8 = arith.constant 0 : index
    %7 = vector.load %arg1[%c0_7, %c0_8] : memref<8x32xf32, #tpu.memory_space<vmem>>, vector<8x32xf32>
    %c0_i32 = arith.constant 0 : i32
    %c8_i32 = arith.constant 8 : i32
    %8 = arith.muli %c0_i32, %c8_i32 : i32
    %9 = tpu.assume_multiple %8, 8 : i32
    %10 = arith.index_cast %9 : i32 to index
    %c0_9 = arith.constant 0 : index
    %11 = vector.load %arg13[%10, %c0_9] : memref<64x32xf32, #tpu.memory_space<vmem>>, vector<8x32xf32>
    %c0_10 = arith.constant 0 : index
    %c0_11 = arith.constant 0 : index
    %12 = vector.load %arg3[%c0_10, %c0_11] : memref<32x32xf32, #tpu.memory_space<vmem>>, vector<32x32xf32>
    %cst_12 = arith.constant dense<0.000000e+00> : vector<8x32xf32>
    %13 = tpu.matmul %7, %12, %cst_12 {dimension_numbers = #tpu.dot_dimension_numbers<[1], [0], [0], [1], [0, 0, 1, 1], [], []>} : vector<8x32xf32>, vector<32x32xf32>, vector<8x32xf32> -> vector<8x32xf32>
    %14 = arith.addf %13, %11 : vector<8x32xf32>
    %c0_13 = arith.constant 0 : index
    %c0_14 = arith.constant 0 : index
    %15 = vector.load %arg6[%c0_13, %c0_14] : memref<32x32xf32, #tpu.memory_space<vmem>>, vector<32x32xf32>
    %cst_15 = arith.constant dense<0.000000e+00> : vector<8x32xf32>
    %16 = tpu.matmul %14, %15, %cst_15 {dimension_numbers = #tpu.dot_dimension_numbers<[1], [0], [0], [1], [0, 0, 1, 1], [], []>} : vector<8x32xf32>, vector<32x32xf32>, vector<8x32xf32> -> vector<8x32xf32>
    %c0_16 = arith.constant 0 : index
    %c0_17 = arith.constant 0 : index
    %17 = vector.load %arg7[%c0_16, %c0_17] : memref<1x32xf32, #tpu.memory_space<vmem>>, vector<1x32xf32>
    %18 = vector.broadcast %17 : vector<1x32xf32> to vector<8x32xf32>
    %19 = arith.addf %16, %18 : vector<8x32xf32>
    %20 = arith.addf %14, %19 : vector<8x32xf32>
    %21 = arith.index_cast %9 : i32 to index
    %c0_18 = arith.constant 0 : index
    %22 = vector.load %arg10[%21, %c0_18] : memref<64x32xf32, #tpu.memory_space<vmem>>, vector<8x32xf32>
    tpu.vector_store %arg10[%21, %c0_18], %20 {strides = array<i32>} : memref<64x32xf32, #tpu.memory_space<vmem>>, vector<8x32xf32>,
    %23 = arith.index_cast %9 : i32 to index
    %c0_19 = arith.constant 0 : index
    %24 = vector.load %arg12[%23, %c0_19] : memref<64x32xf32, #tpu.memory_space<vmem>>, vector<8x32xf32>
    tpu.vector_store %arg12[%23, %c0_19], %19 {strides = array<i32>} : memref<64x32xf32, #tpu.memory_space<vmem>>, vector<8x32xf32>,
    %c1_i32 = arith.constant 1 : i32
    %c8_i32_20 = arith.constant 8 : i32
    %25 = arith.muli %c1_i32, %c8_i32_20 : i32
    %26 = tpu.assume_multiple %25, 8 : i32
    %27 = arith.index_cast %26 : i32 to index
    %c0_21 = arith.constant 0 : index
    %28 = vector.load %arg13[%27, %c0_21] : memref<64x32xf32, #tpu.memory_space<vmem>>, vector<8x32xf32>
    %c0_22 = arith.constant 0 : index
    %c0_23 = arith.constant 0 : index
    %29 = vector.load %arg3[%c0_22, %c0_23] : memref<32x32xf32, #tpu.memory_space<vmem>>, vector<32x32xf32>
    %cst_24 = arith.constant dense<0.000000e+00> : vector<8x32xf32>
    %30 = tpu.matmul %20, %29, %cst_24 {dimension_numbers = #tpu.dot_dimension_numbers<[1], [0], [0], [1], [0, 0, 1, 1], [], []>} : vector<8x32xf32>, vector<32x32xf32>, vector<8x32xf32> -> vector<8x32xf32>
    %31 = arith.addf %30, %28 : vector<8x32xf32>
    %c0_25 = arith.constant 0 : index
    %c0_26 = arith.constant 0 : index
    %32 = vector.load %arg6[%c0_25, %c0_26] : memref<32x32xf32, #tpu.memory_space<vmem>>, vector<32x32xf32>
    %cst_27 = arith.constant dense<0.000000e+00> : vector<8x32xf32>
    %33 = tpu.matmul %31, %32, %cst_27 {dimension_numbers = #tpu.dot_dimension_numbers<[1], [0], [0], [1], [0, 0, 1, 1], [], []>} : vector<8x32xf32>, vector<32x32xf32>, vector<8x32xf32> -> vector<8x32xf32>
    %c0_28 = arith.constant 0 : index
    %c0_29 = arith.constant 0 : index
    %34 = vector.load %arg7[%c0_28, %c0_29] : memref<1x32xf32, #tpu.memory_space<vmem>>, vector<1x32xf32>
    %35 = vector.broadcast %34 : vector<1x32xf32> to vector<8x32xf32>
    %36 = arith.addf %33, %35 : vector<8x32xf32>
    %37 = arith.addf %31, %36 : vector<8x32xf32>
    %38 = arith.index_cast %26 : i32 to index
    %c0_30 = arith.constant 0 : index
    %39 = vector.load %arg10[%38, %c0_30] : memref<64x32xf32, #tpu.memory_space<vmem>>, vector<8x32xf32>
    tpu.vector_store %arg10[%38, %c0_30], %37 {strides = array<i32>} : memref<64x32xf32, #tpu.memory_space<vmem>>, vector<8x32xf32>,
    %40 = arith.index_cast %26 : i32 to index
    %c0_31 = arith.constant 0 : index
    %41 = vector.load %arg12[%40, %c0_31] : memref<64x32xf32, #tpu.memory_space<vmem>>, vector<8x32xf32>
    tpu.vector_store %arg12[%40, %c0_31], %36 {strides = array<i32>} : memref<64x32xf32, #tpu.memory_space<vmem>>, vector<8x32xf32>,
    %c2_i32 = arith.constant 2 : i32
    %c8_i32_32 = arith.constant 8 : i32
    %42 = arith.muli %c2_i32, %c8_i32_32 : i32
    %43 = tpu.assume_multiple %42, 8 : i32
    %44 = arith.index_cast %43 : i32 to index
    %c0_33 = arith.constant 0 : index
    %45 = vector.load %arg13[%44, %c0_33] : memref<64x32xf32, #tpu.memory_space<vmem>>, vector<8x32xf32>
    %c0_34 = arith.constant 0 : index
    %c0_35 = arith.constant 0 : index
    %46 = vector.load %arg3[%c0_34, %c0_35] : memref<32x32xf32, #tpu.memory_space<vmem>>, vector<32x32xf32>
    %cst_36 = arith.constant dense<0.000000e+00> : vector<8x32xf32>
    %47 = tpu.matmul %37, %46, %cst_36 {dimension_numbers = #tpu.dot_dimension_numbers<[1], [0], [0], [1], [0, 0, 1, 1], [], []>} : vector<8x32xf32>, vector<32x32xf32>, vector<8x32xf32> -> vector<8x32xf32>
    %48 = arith.addf %47, %45 : vector<8x32xf32>
    %c0_37 = arith.constant 0 : index
    %c0_38 = arith.constant 0 : index
    %49 = vector.load %arg6[%c0_37, %c0_38] : memref<32x32xf32, #tpu.memory_space<vmem>>, vector<32x32xf32>
    %cst_39 = arith.constant dense<0.000000e+00> : vector<8x32xf32>
    %50 = tpu.matmul %48, %49, %cst_39 {dimension_numbers = #tpu.dot_dimension_numbers<[1], [0], [0], [1], [0, 0, 1, 1], [], []>} : vector<8x32xf32>, vector<32x32xf32>, vector<8x32xf32> -> vector<8x32xf32>
    %c0_40 = arith.constant 0 : index
    %c0_41 = arith.constant 0 : index
    %51 = vector.load %arg7[%c0_40, %c0_41] : memref<1x32xf32, #tpu.memory_space<vmem>>, vector<1x32xf32>
    %52 = vector.broadcast %51 : vector<1x32xf32> to vector<8x32xf32>
    %53 = arith.addf %50, %52 : vector<8x32xf32>
    %54 = arith.addf %48, %53 : vector<8x32xf32>
    %55 = arith.index_cast %43 : i32 to index
    %c0_42 = arith.constant 0 : index
    %56 = vector.load %arg10[%55, %c0_42] : memref<64x32xf32, #tpu.memory_space<vmem>>, vector<8x32xf32>
    tpu.vector_store %arg10[%55, %c0_42], %54 {strides = array<i32>} : memref<64x32xf32, #tpu.memory_space<vmem>>, vector<8x32xf32>,
    %57 = arith.index_cast %43 : i32 to index
    %c0_43 = arith.constant 0 : index
    %58 = vector.load %arg12[%57, %c0_43] : memref<64x32xf32, #tpu.memory_space<vmem>>, vector<8x32xf32>
    tpu.vector_store %arg12[%57, %c0_43], %53 {strides = array<i32>} : memref<64x32xf32, #tpu.memory_space<vmem>>, vector<8x32xf32>,
    %c3_i32 = arith.constant 3 : i32
    %c8_i32_44 = arith.constant 8 : i32
    %59 = arith.muli %c3_i32, %c8_i32_44 : i32
    %60 = tpu.assume_multiple %59, 8 : i32
    %61 = arith.index_cast %60 : i32 to index
    %c0_45 = arith.constant 0 : index
    %62 = vector.load %arg13[%61, %c0_45] : memref<64x32xf32, #tpu.memory_space<vmem>>, vector<8x32xf32>
    %c0_46 = arith.constant 0 : index
    %c0_47 = arith.constant 0 : index
    %63 = vector.load %arg3[%c0_46, %c0_47] : memref<32x32xf32, #tpu.memory_space<vmem>>, vector<32x32xf32>
    %cst_48 = arith.constant dense<0.000000e+00> : vector<8x32xf32>
    %64 = tpu.matmul %54, %63, %cst_48 {dimension_numbers = #tpu.dot_dimension_numbers<[1], [0], [0], [1], [0, 0, 1, 1], [], []>} : vector<8x32xf32>, vector<32x32xf32>, vector<8x32xf32> -> vector<8x32xf32>
    %65 = arith.addf %64, %62 : vector<8x32xf32>
    %c0_49 = arith.constant 0 : index
    %c0_50 = arith.constant 0 : index
    %66 = vector.load %arg6[%c0_49, %c0_50] : memref<32x32xf32, #tpu.memory_space<vmem>>, vector<32x32xf32>
    %cst_51 = arith.constant dense<0.000000e+00> : vector<8x32xf32>
    %67 = tpu.matmul %65, %66, %cst_51 {dimension_numbers = #tpu.dot_dimension_numbers<[1], [0], [0], [1], [0, 0, 1, 1], [], []>} : vector<8x32xf32>, vector<32x32xf32>, vector<8x32xf32> -> vector<8x32xf32>
    %c0_52 = arith.constant 0 : index
    %c0_53 = arith.constant 0 : index
    %68 = vector.load %arg7[%c0_52, %c0_53] : memref<1x32xf32, #tpu.memory_space<vmem>>, vector<1x32xf32>
    %69 = vector.broadcast %68 : vector<1x32xf32> to vector<8x32xf32>
    %70 = arith.addf %67, %69 : vector<8x32xf32>
    %71 = arith.addf %65, %70 : vector<8x32xf32>
    %72 = arith.index_cast %60 : i32 to index
    %c0_54 = arith.constant 0 : index
    %73 = vector.load %arg10[%72, %c0_54] : memref<64x32xf32, #tpu.memory_space<vmem>>, vector<8x32xf32>
    tpu.vector_store %arg10[%72, %c0_54], %71 {strides = array<i32>} : memref<64x32xf32, #tpu.memory_space<vmem>>, vector<8x32xf32>,
    %74 = arith.index_cast %60 : i32 to index
    %c0_55 = arith.constant 0 : index
    %75 = vector.load %arg12[%74, %c0_55] : memref<64x32xf32, #tpu.memory_space<vmem>>, vector<8x32xf32>
    tpu.vector_store %arg12[%74, %c0_55], %70 {strides = array<i32>} : memref<64x32xf32, #tpu.memory_space<vmem>>, vector<8x32xf32>,
    %c4_i32 = arith.constant 4 : i32
    %c8_i32_56 = arith.constant 8 : i32
    %76 = arith.muli %c4_i32, %c8_i32_56 : i32
    %77 = tpu.assume_multiple %76, 8 : i32
    %78 = arith.index_cast %77 : i32 to index
    %c0_57 = arith.constant 0 : index
    %79 = vector.load %arg13[%78, %c0_57] : memref<64x32xf32, #tpu.memory_space<vmem>>, vector<8x32xf32>
    %c0_58 = arith.constant 0 : index
    %c0_59 = arith.constant 0 : index
    %80 = vector.load %arg3[%c0_58, %c0_59] : memref<32x32xf32, #tpu.memory_space<vmem>>, vector<32x32xf32>
    %cst_60 = arith.constant dense<0.000000e+00> : vector<8x32xf32>
    %81 = tpu.matmul %71, %80, %cst_60 {dimension_numbers = #tpu.dot_dimension_numbers<[1], [0], [0], [1], [0, 0, 1, 1], [], []>} : vector<8x32xf32>, vector<32x32xf32>, vector<8x32xf32> -> vector<8x32xf32>
    %82 = arith.addf %81, %79 : vector<8x32xf32>
    %c0_61 = arith.constant 0 : index
    %c0_62 = arith.constant 0 : index
    %83 = vector.load %arg6[%c0_61, %c0_62] : memref<32x32xf32, #tpu.memory_space<vmem>>, vector<32x32xf32>
    %cst_63 = arith.constant dense<0.000000e+00> : vector<8x32xf32>
    %84 = tpu.matmul %82, %83, %cst_63 {dimension_numbers = #tpu.dot_dimension_numbers<[1], [0], [0], [1], [0, 0, 1, 1], [], []>} : vector<8x32xf32>, vector<32x32xf32>, vector<8x32xf32> -> vector<8x32xf32>
    %c0_64 = arith.constant 0 : index
    %c0_65 = arith.constant 0 : index
    %85 = vector.load %arg7[%c0_64, %c0_65] : memref<1x32xf32, #tpu.memory_space<vmem>>, vector<1x32xf32>
    %86 = vector.broadcast %85 : vector<1x32xf32> to vector<8x32xf32>
    %87 = arith.addf %84, %86 : vector<8x32xf32>
    %88 = arith.addf %82, %87 : vector<8x32xf32>
    %89 = arith.index_cast %77 : i32 to index
    %c0_66 = arith.constant 0 : index
    %90 = vector.load %arg10[%89, %c0_66] : memref<64x32xf32, #tpu.memory_space<vmem>>, vector<8x32xf32>
    tpu.vector_store %arg10[%89, %c0_66], %88 {strides = array<i32>} : memref<64x32xf32, #tpu.memory_space<vmem>>, vector<8x32xf32>,
    %91 = arith.index_cast %77 : i32 to index
    %c0_67 = arith.constant 0 : index
    %92 = vector.load %arg12[%91, %c0_67] : memref<64x32xf32, #tpu.memory_space<vmem>>, vector<8x32xf32>
    tpu.vector_store %arg12[%91, %c0_67], %87 {strides = array<i32>} : memref<64x32xf32, #tpu.memory_space<vmem>>, vector<8x32xf32>,
    %c5_i32 = arith.constant 5 : i32
    %c8_i32_68 = arith.constant 8 : i32
    %93 = arith.muli %c5_i32, %c8_i32_68 : i32
    %94 = tpu.assume_multiple %93, 8 : i32
    %95 = arith.index_cast %94 : i32 to index
    %c0_69 = arith.constant 0 : index
    %96 = vector.load %arg13[%95, %c0_69] : memref<64x32xf32, #tpu.memory_space<vmem>>, vector<8x32xf32>
    %c0_70 = arith.constant 0 : index
    %c0_71 = arith.constant 0 : index
    %97 = vector.load %arg3[%c0_70, %c0_71] : memref<32x32xf32, #tpu.memory_space<vmem>>, vector<32x32xf32>
    %cst_72 = arith.constant dense<0.000000e+00> : vector<8x32xf32>
    %98 = tpu.matmul %88, %97, %cst_72 {dimension_numbers = #tpu.dot_dimension_numbers<[1], [0], [0], [1], [0, 0, 1, 1], [], []>} : vector<8x32xf32>, vector<32x32xf32>, vector<8x32xf32> -> vector<8x32xf32>
    %99 = arith.addf %98, %96 : vector<8x32xf32>
    %c0_73 = arith.constant 0 : index
    %c0_74 = arith.constant 0 : index
    %100 = vector.load %arg6[%c0_73, %c0_74] : memref<32x32xf32, #tpu.memory_space<vmem>>, vector<32x32xf32>
    %cst_75 = arith.constant dense<0.000000e+00> : vector<8x32xf32>
    %101 = tpu.matmul %99, %100, %cst_75 {dimension_numbers = #tpu.dot_dimension_numbers<[1], [0], [0], [1], [0, 0, 1, 1], [], []>} : vector<8x32xf32>, vector<32x32xf32>, vector<8x32xf32> -> vector<8x32xf32>
    %c0_76 = arith.constant 0 : index
    %c0_77 = arith.constant 0 : index
    %102 = vector.load %arg7[%c0_76, %c0_77] : memref<1x32xf32, #tpu.memory_space<vmem>>, vector<1x32xf32>
    %103 = vector.broadcast %102 : vector<1x32xf32> to vector<8x32xf32>
    %104 = arith.addf %101, %103 : vector<8x32xf32>
    %105 = arith.addf %99, %104 : vector<8x32xf32>
    %106 = arith.index_cast %94 : i32 to index
    %c0_78 = arith.constant 0 : index
    %107 = vector.load %arg10[%106, %c0_78] : memref<64x32xf32, #tpu.memory_space<vmem>>, vector<8x32xf32>
    tpu.vector_store %arg10[%106, %c0_78], %105 {strides = array<i32>} : memref<64x32xf32, #tpu.memory_space<vmem>>, vector<8x32xf32>,
    %108 = arith.index_cast %94 : i32 to index
    %c0_79 = arith.constant 0 : index
    %109 = vector.load %arg12[%108, %c0_79] : memref<64x32xf32, #tpu.memory_space<vmem>>, vector<8x32xf32>
    tpu.vector_store %arg12[%108, %c0_79], %104 {strides = array<i32>} : memref<64x32xf32, #tpu.memory_space<vmem>>, vector<8x32xf32>,
    %c6_i32 = arith.constant 6 : i32
    %c8_i32_80 = arith.constant 8 : i32
    %110 = arith.muli %c6_i32, %c8_i32_80 : i32
    %111 = tpu.assume_multiple %110, 8 : i32
    %112 = arith.index_cast %111 : i32 to index
    %c0_81 = arith.constant 0 : index
    %113 = vector.load %arg13[%112, %c0_81] : memref<64x32xf32, #tpu.memory_space<vmem>>, vector<8x32xf32>
    %c0_82 = arith.constant 0 : index
    %c0_83 = arith.constant 0 : index
    %114 = vector.load %arg3[%c0_82, %c0_83] : memref<32x32xf32, #tpu.memory_space<vmem>>, vector<32x32xf32>
    %cst_84 = arith.constant dense<0.000000e+00> : vector<8x32xf32>
    %115 = tpu.matmul %105, %114, %cst_84 {dimension_numbers = #tpu.dot_dimension_numbers<[1], [0], [0], [1], [0, 0, 1, 1], [], []>} : vector<8x32xf32>, vector<32x32xf32>, vector<8x32xf32> -> vector<8x32xf32>
    %116 = arith.addf %115, %113 : vector<8x32xf32>
    %c0_85 = arith.constant 0 : index
    %c0_86 = arith.constant 0 : index
    %117 = vector.load %arg6[%c0_85, %c0_86] : memref<32x32xf32, #tpu.memory_space<vmem>>, vector<32x32xf32>
    %cst_87 = arith.constant dense<0.000000e+00> : vector<8x32xf32>
    %118 = tpu.matmul %116, %117, %cst_87 {dimension_numbers = #tpu.dot_dimension_numbers<[1], [0], [0], [1], [0, 0, 1, 1], [], []>} : vector<8x32xf32>, vector<32x32xf32>, vector<8x32xf32> -> vector<8x32xf32>
    %c0_88 = arith.constant 0 : index
    %c0_89 = arith.constant 0 : index
    %119 = vector.load %arg7[%c0_88, %c0_89] : memref<1x32xf32, #tpu.memory_space<vmem>>, vector<1x32xf32>
    %120 = vector.broadcast %119 : vector<1x32xf32> to vector<8x32xf32>
    %121 = arith.addf %118, %120 : vector<8x32xf32>
    %122 = arith.addf %116, %121 : vector<8x32xf32>
    %123 = arith.index_cast %111 : i32 to index
    %c0_90 = arith.constant 0 : index
    %124 = vector.load %arg10[%123, %c0_90] : memref<64x32xf32, #tpu.memory_space<vmem>>, vector<8x32xf32>
    tpu.vector_store %arg10[%123, %c0_90], %122 {strides = array<i32>} : memref<64x32xf32, #tpu.memory_space<vmem>>, vector<8x32xf32>,
    %125 = arith.index_cast %111 : i32 to index
    %c0_91 = arith.constant 0 : index
    %126 = vector.load %arg12[%125, %c0_91] : memref<64x32xf32, #tpu.memory_space<vmem>>, vector<8x32xf32>
    tpu.vector_store %arg12[%125, %c0_91], %121 {strides = array<i32>} : memref<64x32xf32, #tpu.memory_space<vmem>>, vector<8x32xf32>,
    %c7_i32 = arith.constant 7 : i32
    %c8_i32_92 = arith.constant 8 : i32
    %127 = arith.muli %c7_i32, %c8_i32_92 : i32
    %128 = tpu.assume_multiple %127, 8 : i32
    %129 = arith.index_cast %128 : i32 to index
    %c0_93 = arith.constant 0 : index
    %130 = vector.load %arg13[%129, %c0_93] : memref<64x32xf32, #tpu.memory_space<vmem>>, vector<8x32xf32>
    %c0_94 = arith.constant 0 : index
    %c0_95 = arith.constant 0 : index
    %131 = vector.load %arg3[%c0_94, %c0_95] : memref<32x32xf32, #tpu.memory_space<vmem>>, vector<32x32xf32>
    %cst_96 = arith.constant dense<0.000000e+00> : vector<8x32xf32>
    %132 = tpu.matmul %122, %131, %cst_96 {dimension_numbers = #tpu.dot_dimension_numbers<[1], [0], [0], [1], [0, 0, 1, 1], [], []>} : vector<8x32xf32>, vector<32x32xf32>, vector<8x32xf32> -> vector<8x32xf32>
    %133 = arith.addf %132, %130 : vector<8x32xf32>
    %c0_97 = arith.constant 0 : index
    %c0_98 = arith.constant 0 : index
    %134 = vector.load %arg6[%c0_97, %c0_98] : memref<32x32xf32, #tpu.memory_space<vmem>>, vector<32x32xf32>
    %cst_99 = arith.constant dense<0.000000e+00> : vector<8x32xf32>
    %135 = tpu.matmul %133, %134, %cst_99 {dimension_numbers = #tpu.dot_dimension_numbers<[1], [0], [0], [1], [0, 0, 1, 1], [], []>} : vector<8x32xf32>, vector<32x32xf32>, vector<8x32xf32> -> vector<8x32xf32>
    %c0_100 = arith.constant 0 : index
    %c0_101 = arith.constant 0 : index
    %136 = vector.load %arg7[%c0_100, %c0_101] : memref<1x32xf32, #tpu.memory_space<vmem>>, vector<1x32xf32>
    %137 = vector.broadcast %136 : vector<1x32xf32> to vector<8x32xf32>
    %138 = arith.addf %135, %137 : vector<8x32xf32>
    %139 = arith.addf %133, %138 : vector<8x32xf32>
    %140 = arith.index_cast %128 : i32 to index
    %c0_102 = arith.constant 0 : index
    %141 = vector.load %arg10[%140, %c0_102] : memref<64x32xf32, #tpu.memory_space<vmem>>, vector<8x32xf32>
    tpu.vector_store %arg10[%140, %c0_102], %139 {strides = array<i32>} : memref<64x32xf32, #tpu.memory_space<vmem>>, vector<8x32xf32>,
    %142 = arith.index_cast %128 : i32 to index
    %c0_103 = arith.constant 0 : index
    %143 = vector.load %arg12[%142, %c0_103] : memref<64x32xf32, #tpu.memory_space<vmem>>, vector<8x32xf32>
    tpu.vector_store %arg12[%142, %c0_103], %138 {strides = array<i32>} : memref<64x32xf32, #tpu.memory_space<vmem>>, vector<8x32xf32>,
    %c8_i32_104 = arith.constant 8 : i32
    %c0_105 = arith.constant 0 : index
    %c0_106 = arith.constant 0 : index
    %144 = vector.load %arg10[%c0_105, %c0_106] : memref<64x32xf32, #tpu.memory_space<vmem>>, vector<64x32xf32>
    %c0_107 = arith.constant 0 : index
    %c0_108 = arith.constant 0 : index
    %145 = vector.load %arg8[%c0_107, %c0_108] : memref<32x8xf32, #tpu.memory_space<vmem>>, vector<32x8xf32>
    %cst_109 = arith.constant dense<0.000000e+00> : vector<64x8xf32>
    %146 = tpu.matmul %144, %145, %cst_109 {dimension_numbers = #tpu.dot_dimension_numbers<[1], [0], [0], [1], [0, 0, 1, 1], [], []>} : vector<64x32xf32>, vector<32x8xf32>, vector<64x8xf32> -> vector<64x8xf32>
    %c0_110 = arith.constant 0 : index
    %c0_111 = arith.constant 0 : index
    %147 = vector.load %arg9[%c0_110, %c0_111] : memref<1x8xf32, #tpu.memory_space<vmem>>, vector<1x8xf32>
    %148 = vector.broadcast %147 : vector<1x8xf32> to vector<64x8xf32>
    %149 = arith.addf %146, %148 : vector<64x8xf32>
    %c0_112 = arith.constant 0 : index
    %c0_113 = arith.constant 0 : index
    %150 = vector.load %arg11[%c0_112, %c0_113] : memref<64x8xf32, #tpu.memory_space<vmem>>, vector<64x8xf32>
    tpu.vector_store %arg11[%c0_112, %c0_113], %149 {strides = array<i32>} : memref<64x8xf32, #tpu.memory_space<vmem>>, vector<64x8xf32>,
    return
  }
  func.func @transform_0(%arg0: i32) -> (i32, i32) {
    %c0_i32 = arith.constant 0 : i32
    %c0_i32_0 = arith.constant 0 : i32
    %c0_i32_1 = arith.constant 0 : i32
    return %c0_i32, %c0_i32_0 : i32, i32
  }
  func.func @transform_1(%arg0: i32) -> (i32, i32) {
    %c0_i32 = arith.constant 0 : i32
    %c0_i32_0 = arith.constant 0 : i32
    %c0_i32_1 = arith.constant 0 : i32
    return %c0_i32, %c0_i32_0 : i32, i32
  }
  func.func @transform_2(%arg0: i32) -> (i32, i32) {
    %c0_i32 = arith.constant 0 : i32
    %c0_i32_0 = arith.constant 0 : i32
    %c0_i32_1 = arith.constant 0 : i32
    return %c0_i32, %c0_i32_0 : i32, i32
  }
  func.func @transform_3(%arg0: i32) -> (i32, i32) {
    %c0_i32 = arith.constant 0 : i32
    %c0_i32_0 = arith.constant 0 : i32
    %c0_i32_1 = arith.constant 0 : i32
    return %c0_i32, %c0_i32_0 : i32, i32
  }
  func.func @transform_4(%arg0: i32) -> (i32, i32) {
    %c0_i32 = arith.constant 0 : i32
    %c0_i32_0 = arith.constant 0 : i32
    %c0_i32_1 = arith.constant 0 : i32
    return %c0_i32, %c0_i32_0 : i32, i32
  }
  func.func @transform_5(%arg0: i32) -> (i32, i32) {
    %c0_i32 = arith.constant 0 : i32
    %c0_i32_0 = arith.constant 0 : i32
    %c0_i32_1 = arith.constant 0 : i32
    return %c0_i32, %c0_i32_0 : i32, i32
  }
  func.func @transform_6(%arg0: i32) -> (i32, i32) {
    %c0_i32 = arith.constant 0 : i32
    %c0_i32_0 = arith.constant 0 : i32
    %c0_i32_1 = arith.constant 0 : i32
    return %c0_i32, %c0_i32_0 : i32, i32
  }
  func.func @transform_7(%arg0: i32) -> (i32, i32) {
    %c0_i32 = arith.constant 0 : i32
    %c0_i32_0 = arith.constant 0 : i32
    %c0_i32_1 = arith.constant 0 : i32
    return %c0_i32, %c0_i32_0 : i32, i32
  }
  func.func @transform_8(%arg0: i32) -> (i32, i32) {
    %c0_i32 = arith.constant 0 : i32
    %c0_i32_0 = arith.constant 0 : i32
    %c0_i32_1 = arith.constant 0 : i32
    return %c0_i32, %c0_i32_0 : i32, i32
  }
  func.func @transform_9(%arg0: i32) -> (i32, i32) {
    %c0_i32 = arith.constant 0 : i32
    %c0_i32_0 = arith.constant 0 : i32
    %c0_i32_1 = arith.constant 0 : i32
    return %c0_i32, %c0_i32_0 : i32, i32
  }
  func.func @transform_10(%arg0: i32) -> (i32, i32) {
    %c0_i32 = arith.constant 0 : i32
    %c0_i32_0 = arith.constant 0 : i32
    %c0_i32_1 = arith.constant 0 : i32
    return %c0_i32, %c0_i32_0 : i32, i32
  }
  func.func @transform_11(%arg0: i32) -> (i32, i32) {
    %c0_i32 = arith.constant 0 : i32
    %c0_i32_0 = arith.constant 0 : i32
    %c0_i32_1 = arith.constant 0 : i32
    return %c0_i32, %c0_i32_0 : i32, i32
  }
}

</mosaic_0001>

<bundles_post_ra>
// kernel: tpu_custom_call.1
= control target key start
LH: loop header
LB: loop body
LE: loop exit
PB: predicated region body
PF: predicated region fallthrough
CT: control target
= control target key end

     0   :  { %vm54_vm0 = vcmask 261120   ;;  %v2198_v13 = vmov 0.0|0.0   ;;  %vm2199_vm1 = vmmov 0   ;;  %v2200_v19 = vmov 0.0   ;;  %s2619_s3 = inlined_call_operand.vmem [shape: f32[32,32], index: 3, kind: input, shape index: {}]   ;;  %s2620_s1 = inlined_call_operand.vmem [shape: f32[64,32], index: 1, kind: input, shape index: {}]   ;;  %s2621_s2 = inlined_call_operand.vmem [shape: f32[32,32], index: 2, kind: input, shape index: {}]   ;;  %s2622_s0 = inlined_call_operand.vmem [shape: f32[8,32], index: 0, kind: input, shape index: {}]   ;;  %s2623_s5 = inlined_call_operand.vmem [shape: f32[32,32], index: 5, kind: input, shape index: {}]   ;;  %s2624_s4 = inlined_call_operand.vmem [shape: f32[1,32], index: 4, kind: input, shape index: {}]   ;;  %s2625_s6 = inlined_call_operand.vmem [shape: f32[1,32], index: 6, kind: input, shape index: {}]   ;;  %s2626_s11 = inlined_call_operand.vmem [shape: f32[64,32], index: 11, kind: output, shape index: {2}]   ;;  %s2627_s9 = inlined_call_operand.vmem [shape: f32[64,32], index: 9, kind: output, shape index: {0}]   ;;  %s2628_s7 = inlined_call_operand.vmem [shape: f32[32,8], index: 7, kind: input, shape index: {}]   ;;  %s2629_s8 = inlined_call_operand.vmem [shape: f32[1,8], index: 8, kind: input, shape index: {}]   ;;  %s2630_s10 = inlined_call_operand.vmem [shape: f32[64,8], index: 10, kind: output, shape index: {1}]  }
   0x1   :  { %v43_v0 = vld [vmem:[%s2619_s3] sm:$0xff]  ;;  %v44_v1 = vld [vmem:[%s2619_s3 + $0x8] sm:$0xff]  ;;  %v45_v2 = vld [vmem:[%s2619_s3 + $0x10] sm:$0xff]  ;;  %vm1682_vm2 = vcmask 64512  }
   0x2   :  { %v2079_v3 = vpack.c.bf16 %v44_v1, %v43_v0  ;;  %v46_v4 = vld [vmem:[%s2619_s3 + $0x18] sm:$0xff]  ;;  %v35_v5 = vld [vmem:[%s2620_s1] sm:$0xff]  ;;  %v195_v9 = vld [vmem:[%s2621_s2 + $0x8] sm:$0xff] }
   0x3   :  { %v2083_v6 = vpack.c.bf16 %v46_v4, %v45_v2  ;;  %1871 = vmatprep.mubr.msk.f32.mxu0 %vm54_vm0, %v35_v5  ;;  %v39_v7 = vld [vmem:[%s2620_s1 + $0x20] sm:$0xff]  ;;  %v36_v10 = vld [vmem:[%s2620_s1 + $0x8] sm:$0xff]  ;;  %v41_v14 = vld [vmem:[%s2620_s1 + $0x30] sm:$0xff] }
   0x4   :  { %2080 = vmatprep.subr.bf16.mxu0 %v2079_v3  ;;  %2191 = vmatprep.subr.bf16.mxu1 %v2079_v3  ;;  %v194_v8 = vld [vmem:[%s2621_s2] sm:$0xff]  ;;  %v40_v11 = vld [vmem:[%s2620_s1 + $0x28] sm:$0xff]  ;;  %v196_v15 = vld [vmem:[%s2621_s2 + $0x10] sm:$0xff] }
   0x5   :  { %2082 = vmatpush3.bf16.msra.mxu0 %v2079_v3  ;;  %2193 = vmatpush3.bf16.msra.mxu1 %v2079_v3  ;;  %v2293_v12 = vpack.c.bf16 %v195_v9, %v194_v8  ;;  %v197_v16 = vld [vmem:[%s2621_s2 + $0x18] sm:$0xff]  ;;  %v192_v20 = vld [vmem:[%s2622_s0] sm:$0xff]  ;;  %v272_v22 = vld [vmem:[%s2623_s5 + $0x8] sm:$0xff] }
   0x6   :  { %2084 = vmatprep.subr.bf16.mxu0 %v2083_v6  ;;  %2192 = vmatprep.subr.bf16.mxu1 %v2083_v6  ;;  %v42_v17 = vld [vmem:[%s2620_s1 + $0x38] sm:$0xff]  ;;  %v2313_v18 = vpack.c.bf16 %v197_v16, %v196_v15  ;;  %v271_v21 = vld [vmem:[%s2623_s5] sm:$0xff]  ;;  %v273_v24 = vld [vmem:[%s2623_s5 + $0x10] sm:$0xff] }
   0x7   :  { %1877 = vmatprep.mubr.msk.f32.mxu1 %vm54_vm0, %v39_v7  ;;  %v2337_v23 = vpack.c.bf16 %v272_v22, %v271_v21  ;;  %v274_v25 = vld [vmem:[%s2623_s5 + $0x18] sm:$0xff]  ;;  %v37_v27 = vld [vmem:[%s2620_s1 + $0x10] sm:$0xff]  ;;  %v1703_v29 = vld [vmem:[%s2624_s4] ss:$0 sm:$0xff] }
   0x8   :  { %v2347_v26 = vpack.c.bf16 %v274_v25, %v273_v24  ;;  %v38_v28 = vld [vmem:[%s2620_s1 + $0x18] sm:$0xff]  ;;  %v2382_v50 = vld [vmem:[%s2625_s6] ss:$0 sm:$0xff] }
   0x9   :  { %2086 = vmatpush3.bf16.msra.mxu0 %v2083_v6  ;;  %2194 = vmatpush3.bf16.msra.mxu1 %v2083_v6 }
   0xa   :  { %2087 = vmatprep.subr.bf16.mxu1 %v2198_v13  ;;  %2099 = vmatprep.subr.bf16.mxu0 %v2198_v13 }
   0xc   :  { %1872 = vmatmul.mubr.msk.f32.vlgmr.msra.gmra.mrb[0].mxu0 %vm54_vm0, %v36_v10  ;;  %1878 = vmatmul.mubr.msk.f32.vlgmr.msra.gmra.mrb[0].mxu1 %vm54_vm0, %v40_v11 }
   0xd   :  { %2089 = vmatpush3.bf16.msra.mxu1 %v2293_v12  ;;  %1880 = vmatprep.mubr.msk.f32.mxu1 %vm54_vm0, %v41_v14 }
   0xe   :  { %2090 = vmatprep.subr.bf16.mxu1 %v2198_v13  ;;  %2101 = vmatpush3.bf16.msra.mxu0 %v2293_v12 }
   0xf   :  { %2102 = vmatprep.subr.bf16.mxu0 %v2198_v13  ;;  %1874 = vmatprep.mubr.msk.f32.mxu0 %vm54_vm0, %v37_v27 }
  0x10   :  { %1881 = vmatmul.mubr.msk.f32.gmra.mrb[2].mxu1 %vm54_vm0, %v42_v17  ;;  %1875 = vmatmul.mubr.msk.f32.gmra.mrb[2].mxu0 %vm54_vm0, %v38_v28 }
  0x11   :  { %2092 = vmatpush3.bf16.msra.mxu1 %v2313_v18  ;;  %1891 = vmatprep.mubr.msk.f32.mxu1 %vm2199_vm1, %v2200_v19 }
  0x12   :  { %2093 = vmatprep.subr.bf16.mxu1 %v2198_v13  ;;  %2104 = vmatpush3.bf16.msra.mxu0 %v2313_v18 }
  0x13   :  { %2111 = vmatprep.subr.bf16.mxu0 %v2198_v13  ;;  %1913 = vmatprep.mubr.msk.f32.mxu0 %vm2199_vm1, %v2200_v19 }
  0x14   :  { %1892 = vmatmul.mubr.msk.f32.vlgmr.msra.gmra.mrb[4].mxu1 %vm54_vm0, %v192_v20 }
  0x15   :  { %1902 = vmatprep.mubr.msk.f32.mxu1 %vm2199_vm1, %v2200_v19  ;;  %2095 = vmatpush3.bf16.msra.mxu1 %v2337_v23 }
  0x16   :  { %2096 = vmatprep.subr.bf16.mxu1 %v2198_v13 }
  0x19   :  { %2098 = vmatpush3.bf16.msra.mxu1 %v2347_v26 }
  0x1a   :  { %2105 = vmatprep.subr.bf16.mxu1 %v2198_v13 }
  0xdf   :  { %v1873_v30 = vpop.f32.mrb[0].mxu0  ;;  %v1879_v31 = vpop.f32.mrb[0].mxu1 }
  0xe0   :  { %v151_v32 = vadd.f32 %v1873_v30, %v1703_v29  ;;  %v145_v33 = vpop.f32.mrb[1].mxu0  ;;  %v171_v34 = vadd.f32 %v1879_v31, %v1703_v29  ;;  %v165_v35 = vpop.f32.mrb[1].mxu1 }
  0xe1   :  { %v146_v36 = vadd.f32 %v1703_v29, %v145_v33  ;;  %v166_v37 = vadd.f32 %v1703_v29, %v165_v35 }
  0xe2   :  { %185 = vst.msk [vmem:[#allocation2 + $0x8] sm:$0xff] %vm54_vm0, %v151_v32  ;;  %189 = vst.msk [vmem:[#allocation2 + $0x28] sm:$0xff] %vm54_vm0, %v171_v34 }
  0xe3   :  { %184 = vst.msk [vmem:[#allocation2] sm:$0xff] %vm54_vm0, %v146_v36  ;;  %188 = vst.msk [vmem:[#allocation2 + $0x20] sm:$0xff] %vm54_vm0, %v166_v37  ;;  %v1882_v38 = vpop.f32.mrb[2].mxu1  ;;  %v1876_v46 = vpop.f32.mrb[2].mxu0 }
  0xe4   :  { %v181_v39 = vadd.f32 %v1882_v38, %v1703_v29  ;;  %v175_v40 = vpop.f32.mrb[3].mxu1  ;;  %v161_v47 = vadd.f32 %v1876_v46, %v1703_v29  ;;  %v155_v48 = vpop.f32.mrb[3].mxu0 }
  0xe5   :  { %v176_v41 = vadd.f32 %v1703_v29, %v175_v40  ;;  %v156_v49 = vadd.f32 %v1703_v29, %v155_v48 }
  0xe6   :  { %191 = vst.msk [vmem:[#allocation2 + $0x38] sm:$0xff] %vm54_vm0, %v181_v39  ;;  %187 = vst.msk [vmem:[#allocation2 + $0x18] sm:$0xff] %vm54_vm0, %v161_v47 }
  0xe7   :  { %190 = vst.msk [vmem:[#allocation2 + $0x30] sm:$0xff] %vm54_vm0, %v176_v41  ;;  %v267_v42 = vpop.f32.mrb[4].mxu1  ;;  %186 = vst.msk [vmem:[#allocation2 + $0x10] sm:$0xff] %vm54_vm0, %v156_v49 }
  0xe8   :  { %v1893_v43 = vpop.f32.mrb[5].mxu1 }
  0xe9   :  { %v359_v55 = vld [vmem:[#allocation2 + $0x8] sm:$0xff] }
  0xea   :  { %v193_v44 = vld [vmem:[#allocation2] sm:$0xff]  ;;  %v1031_v29 = vld [vmem:[#allocation2 + $0x28] sm:$0xff] }
  0xeb   :  { %v268_v45 = vadd.f32 %v267_v42, %v193_v44  ;;  %v863_v17 = vld [vmem:[#allocation2 + $0x20] sm:$0xff] }
  0xed   :  { %1903 = vmatmul.mubr.msk.f32.vlgmr.msra.gmra.mrb[6].mxu1 %vm54_vm0, %v268_v45  ;;  %v695_v7 = vld [vmem:[#allocation2 + $0x18] sm:$0xff] }
  0xee   :  { %2107 = vmatpush3.bf16.msra.mxu1 %v2337_v23  ;;  %1924 = vmatprep.mubr.msk.f32.mxu1 %vm2199_vm1, %v2200_v19  ;;  %v527_v63 = vld [vmem:[#allocation2 + $0x10] sm:$0xff] }
  0xef   :  { %2108 = vmatprep.subr.bf16.mxu1 %v2198_v13  ;;  %v1199_v37 = vld [vmem:[#allocation2 + $0x30] sm:$0xff] }
  0xf2   :  { %2110 = vmatpush3.bf16.msra.mxu1 %v2347_v26 }
  0xf3   :  { %2117 = vmatprep.subr.bf16.mxu1 %v2198_v13 }
 0x1c0   :  { %v351_v51 = vpop.f32.mrb[6].mxu1 }
 0x1c1   :  { %v352_v52 = vadd.f32 %v2382_v50, %v351_v51  ;;  %v1904_v53 = vpop.f32.mrb[7].mxu1 }
 0x1c2   :  { %v1367_v53 = vld [vmem:[#allocation2 + $0x38] sm:$0xff] }
 0x1c3   :  { %v355_v54 = vadd.f32 %v352_v52, %v268_v45  ;;  %357 = vst.msk [vmem:[%s2626_s11] sm:$0xff] %vm54_vm0, %v352_v52 }
 0x1c5   :  { %356 = vst.msk [vmem:[%s2627_s9] sm:$0xff] %vm54_vm0, %v355_v54  ;;  %1914 = vmatmul.mubr.msk.f32.vlgmr.msra.gmra.mrb[4].mxu0 %vm54_vm0, %v355_v54 }
 0x1c6   :  { %2113 = vmatpush3.bf16.msra.mxu0 %v2293_v12  ;;  %1935 = vmatprep.mubr.msk.f32.mxu0 %vm2199_vm1, %v2200_v19 }
 0x1c7   :  { %2114 = vmatprep.subr.bf16.mxu0 %v2198_v13 }
 0x1ca   :  { %2116 = vmatpush3.bf16.msra.mxu0 %v2313_v18 }
 0x1cb   :  { %2123 = vmatprep.subr.bf16.mxu0 %v2198_v13 }
 0x1cc   :  { %v1534_v45 = vld [vmem:[%s2627_s9] sm:$0xff] }
 0x298   :  { %v433_v56 = vpop.f32.mrb[4].mxu0 }
 0x299   :  { %v434_v57 = vadd.f32 %v433_v56, %v359_v55  ;;  %v1915_v58 = vpop.f32.mrb[5].mxu0 }
 0x29b   :  { %1925 = vmatmul.mubr.msk.f32.vlgmr.msra.gmra.mrb[8].mxu1 %vm54_vm0, %v434_v57 }
 0x29c   :  { %2119 = vmatpush3.bf16.msra.mxu1 %v2337_v23  ;;  %1946 = vmatprep.mubr.msk.f32.mxu1 %vm2199_vm1, %v2200_v19 }
 0x29d   :  { %2120 = vmatprep.subr.bf16.mxu1 %v2198_v13 }
 0x2a0   :  { %2122 = vmatpush3.bf16.msra.mxu1 %v2347_v26 }
 0x2a1   :  { %2129 = vmatprep.subr.bf16.mxu1 %v2198_v13 }
 0x36e   :  { %v517_v59 = vpop.f32.mrb[8].mxu1 }
 0x36f   :  { %v518_v60 = vadd.f32 %v2382_v50, %v517_v59  ;;  %v1926_v61 = vpop.f32.mrb[9].mxu1 }
 0x371   :  { %v521_v62 = vadd.f32 %v518_v60, %v434_v57  ;;  %1719 = vst.msk [vmem:[%s2626_s11 + $0x8] sm:$0xff] %vm54_vm0, %v518_v60  ;;  %v1750_v57 = vld [vmem:[%s2629_s8] ss:$0 sm:$0xff] }
 0x373   :  { %1718 = vst.msk [vmem:[%s2627_s9 + $0x8] sm:$0xff] %vm54_vm0, %v521_v62  ;;  %1936 = vmatmul.mubr.msk.f32.vlgmr.msra.gmra.mrb[6].mxu0 %vm54_vm0, %v521_v62 }
 0x374   :  { %2125 = vmatpush3.bf16.msra.mxu0 %v2293_v12  ;;  %1957 = vmatprep.mubr.msk.f32.mxu0 %vm2199_vm1, %v2200_v19 }
 0x375   :  { %2126 = vmatprep.subr.bf16.mxu0 %v2198_v13 }
 0x378   :  { %2128 = vmatpush3.bf16.msra.mxu0 %v2313_v18 }
 0x379   :  { %2135 = vmatprep.subr.bf16.mxu0 %v2198_v13 }
 0x37a   :  { %v1535_v46 = vld [vmem:[%s2627_s9 + $0x8] sm:$0xff] }
 0x446   :  { %v601_v0 = vpop.f32.mrb[6].mxu0 }
 0x447   :  { %v602_v1 = vadd.f32 %v601_v0, %v527_v63  ;;  %v1937_v2 = vpop.f32.mrb[7].mxu0 }
 0x449   :  { %1947 = vmatmul.mubr.msk.f32.vlgmr.msra.gmra.mrb[10].mxu1 %vm54_vm0, %v602_v1 }
 0x44a   :  { %2131 = vmatpush3.bf16.msra.mxu1 %v2337_v23  ;;  %1968 = vmatprep.mubr.msk.f32.mxu1 %vm2199_vm1, %v2200_v19 }
 0x44b   :  { %2132 = vmatprep.subr.bf16.mxu1 %v2198_v13 }
 0x44e   :  { %2134 = vmatpush3.bf16.msra.mxu1 %v2347_v26 }
 0x44f   :  { %2141 = vmatprep.subr.bf16.mxu1 %v2198_v13 }
 0x51c   :  { %v685_v3 = vpop.f32.mrb[10].mxu1 }
 0x51d   :  { %v686_v4 = vadd.f32 %v2382_v50, %v685_v3  ;;  %v1948_v5 = vpop.f32.mrb[11].mxu1 }
 0x51f   :  { %v689_v6 = vadd.f32 %v686_v4, %v602_v1  ;;  %1724 = vst.msk [vmem:[%s2626_s11 + $0x10] sm:$0xff] %vm54_vm0, %v686_v4 }
 0x521   :  { %1723 = vst.msk [vmem:[%s2627_s9 + $0x10] sm:$0xff] %vm54_vm0, %v689_v6  ;;  %1958 = vmatmul.mubr.msk.f32.vlgmr.msra.gmra.mrb[8].mxu0 %vm54_vm0, %v689_v6 }
 0x522   :  { %2137 = vmatpush3.bf16.msra.mxu0 %v2293_v12  ;;  %1979 = vmatprep.mubr.msk.f32.mxu0 %vm2199_vm1, %v2200_v19 }
 0x523   :  { %2138 = vmatprep.subr.bf16.mxu0 %v2198_v13 }
 0x526   :  { %2140 = vmatpush3.bf16.msra.mxu0 %v2313_v18 }
 0x527   :  { %2147 = vmatprep.subr.bf16.mxu0 %v2198_v13 }
 0x528   :  { %v1536_v47 = vld [vmem:[%s2627_s9 + $0x10] sm:$0xff] }
 0x5f4   :  { %v769_v8 = vpop.f32.mrb[8].mxu0 }
 0x5f5   :  { %v770_v9 = vadd.f32 %v769_v8, %v695_v7  ;;  %v1959_v10 = vpop.f32.mrb[9].mxu0 }
 0x5f7   :  { %1969 = vmatmul.mubr.msk.f32.vlgmr.msra.gmra.mrb[12].mxu1 %vm54_vm0, %v770_v9 }
 0x5f8   :  { %2143 = vmatpush3.bf16.msra.mxu1 %v2337_v23  ;;  %1990 = vmatprep.mubr.msk.f32.mxu1 %vm2199_vm1, %v2200_v19 }
 0x5f9   :  { %2144 = vmatprep.subr.bf16.mxu1 %v2198_v13 }
 0x5fc   :  { %2146 = vmatpush3.bf16.msra.mxu1 %v2347_v26 }
 0x5fd   :  { %2153 = vmatprep.subr.bf16.mxu1 %v2198_v13 }
 0x6ca   :  { %v853_v11 = vpop.f32.mrb[12].mxu1 }
 0x6cb   :  { %v854_v14 = vadd.f32 %v2382_v50, %v853_v11  ;;  %v1970_v15 = vpop.f32.mrb[13].mxu1 }
 0x6cd   :  { %v857_v16 = vadd.f32 %v854_v14, %v770_v9  ;;  %1729 = vst.msk [vmem:[%s2626_s11 + $0x18] sm:$0xff] %vm54_vm0, %v854_v14 }
 0x6cf   :  { %1728 = vst.msk [vmem:[%s2627_s9 + $0x18] sm:$0xff] %vm54_vm0, %v857_v16  ;;  %1980 = vmatmul.mubr.msk.f32.vlgmr.msra.gmra.mrb[10].mxu0 %vm54_vm0, %v857_v16 }
 0x6d0   :  { %2149 = vmatpush3.bf16.msra.mxu0 %v2293_v12  ;;  %2001 = vmatprep.mubr.msk.f32.mxu0 %vm2199_vm1, %v2200_v19 }
 0x6d1   :  { %2150 = vmatprep.subr.bf16.mxu0 %v2198_v13 }
 0x6d4   :  { %2152 = vmatpush3.bf16.msra.mxu0 %v2313_v18 }
 0x6d5   :  { %2159 = vmatprep.subr.bf16.mxu0 %v2198_v13 }
 0x6d6   :  { %v1537_v48 = vld [vmem:[%s2627_s9 + $0x18] sm:$0xff] }
 0x7a2   :  { %v937_v20 = vpop.f32.mrb[10].mxu0 }
 0x7a3   :  { %v938_v21 = vadd.f32 %v937_v20, %v863_v17  ;;  %v1981_v22 = vpop.f32.mrb[11].mxu0 }
 0x7a5   :  { %1991 = vmatmul.mubr.msk.f32.vlgmr.msra.gmra.mrb[14].mxu1 %vm54_vm0, %v938_v21 }
 0x7a6   :  { %2155 = vmatpush3.bf16.msra.mxu1 %v2337_v23  ;;  %2012 = vmatprep.mubr.msk.f32.mxu1 %vm2199_vm1, %v2200_v19 }
 0x7a7   :  { %2156 = vmatprep.subr.bf16.mxu1 %v2198_v13 }
 0x7aa   :  { %2158 = vmatpush3.bf16.msra.mxu1 %v2347_v26 }
 0x7ab   :  { %2165 = vmatprep.subr.bf16.mxu1 %v2198_v13 }
 0x878   :  { %v1021_v24 = vpop.f32.mrb[14].mxu1 }
 0x879   :  { %v1022_v25 = vadd.f32 %v2382_v50, %v1021_v24  ;;  %v1992_v27 = vpop.f32.mrb[15].mxu1 }
 0x87b   :  { %v1025_v28 = vadd.f32 %v1022_v25, %v938_v21  ;;  %1734 = vst.msk [vmem:[%s2626_s11 + $0x20] sm:$0xff] %vm54_vm0, %v1022_v25 }
 0x87d   :  { %1733 = vst.msk [vmem:[%s2627_s9 + $0x20] sm:$0xff] %vm54_vm0, %v1025_v28  ;;  %2002 = vmatmul.mubr.msk.f32.vlgmr.msra.gmra.mrb[12].mxu0 %vm54_vm0, %v1025_v28 }
 0x87e   :  { %2161 = vmatpush3.bf16.msra.mxu0 %v2293_v12  ;;  %2023 = vmatprep.mubr.msk.f32.mxu0 %vm2199_vm1, %v2200_v19 }
 0x87f   :  { %2162 = vmatprep.subr.bf16.mxu0 %v2198_v13 }
 0x882   :  { %2164 = vmatpush3.bf16.msra.mxu0 %v2313_v18 }
 0x883   :  { %2171 = vmatprep.subr.bf16.mxu0 %v2198_v13 }
 0x884   :  { %v1538_v49 = vld [vmem:[%s2627_s9 + $0x20] sm:$0xff] }
 0x950   :  { %v1105_v30 = vpop.f32.mrb[12].mxu0 }
 0x951   :  { %v1106_v31 = vadd.f32 %v1105_v30, %v1031_v29  ;;  %v2003_v32 = vpop.f32.mrb[13].mxu0 }
 0x953   :  { %2013 = vmatmul.mubr.msk.f32.vlgmr.msra.gmra.mrb[16].mxu1 %vm54_vm0, %v1106_v31 }
 0x954   :  { %2167 = vmatpush3.bf16.msra.mxu1 %v2337_v23  ;;  %2034 = vmatprep.mubr.msk.f32.mxu1 %vm2199_vm1, %v2200_v19 }
 0x955   :  { %2168 = vmatprep.subr.bf16.mxu1 %v2198_v13 }
 0x958   :  { %2170 = vmatpush3.bf16.msra.mxu1 %v2347_v26 }
 0x959   :  { %2177 = vmatprep.subr.bf16.mxu1 %v2198_v13 }
 0xa26   :  { %v1189_v33 = vpop.f32.mrb[16].mxu1 }
 0xa27   :  { %v1190_v34 = vadd.f32 %v2382_v50, %v1189_v33  ;;  %v2014_v35 = vpop.f32.mrb[17].mxu1 }
 0xa29   :  { %v1193_v36 = vadd.f32 %v1190_v34, %v1106_v31  ;;  %1739 = vst.msk [vmem:[%s2626_s11 + $0x28] sm:$0xff] %vm54_vm0, %v1190_v34 }
 0xa2b   :  { %1738 = vst.msk [vmem:[%s2627_s9 + $0x28] sm:$0xff] %vm54_vm0, %v1193_v36  ;;  %2024 = vmatmul.mubr.msk.f32.vlgmr.msra.gmra.mrb[14].mxu0 %vm54_vm0, %v1193_v36 }
 0xa2c   :  { %2173 = vmatpush3.bf16.msra.mxu0 %v2293_v12  ;;  %2045 = vmatprep.mubr.msk.f32.mxu0 %vm2199_vm1, %v2200_v19  ;;  %v1542_v12 = vld [vmem:[%s2628_s7] sm:$0xff] }
 0xa2d   :  { %2174 = vmatprep.subr.bf16.mxu0 %v2198_v13 }
 0xa30   :  { %2176 = vmatpush3.bf16.msra.mxu0 %v2313_v18  ;;  %v1543_v18 = vld [vmem:[%s2628_s7 + $0x8] sm:$0xff] }
 0xa31   :  { %v2183_v41 = vpack.c.bf16 %v1543_v18, %v1542_v12 }
 0xa32   :  { %v1539_v51 = vld [vmem:[%s2627_s9 + $0x28] sm:$0xff] }
 0xa33   :  { %2184 = vmatprep.subr.bf16.mxu0 %v2183_v41 }
 0xafe   :  { %v1273_v38 = vpop.f32.mrb[14].mxu0 }
 0xaff   :  { %v1274_v39 = vadd.f32 %v1273_v38, %v1199_v37  ;;  %v2025_v40 = vpop.f32.mrb[15].mxu0 }
 0xb01   :  { %2035 = vmatmul.mubr.msk.f32.vlgmr.msra.gmra.mrb[18].mxu1 %vm54_vm0, %v1274_v39 }
 0xb02   :  { %2179 = vmatpush3.bf16.msra.mxu1 %v2337_v23  ;;  %2056 = vmatprep.mubr.msk.f32.mxu1 %vm2199_vm1, %v2200_v19  ;;  %v1544_v23 = vld [vmem:[%s2628_s7 + $0x10] sm:$0xff] }
 0xb03   :  { %2180 = vmatprep.subr.bf16.mxu1 %v2198_v13  ;;  %v1545_v13 = vld [vmem:[%s2628_s7 + $0x18] sm:$0xff] }
 0xb04   :  { %v2187_v44 = vpack.c.bf16 %v1545_v13, %v1544_v23 }
 0xb06   :  { %2182 = vmatpush3.bf16.msra.mxu1 %v2347_v26 }
 0xbd4   :  { %v1357_v42 = vpop.f32.mrb[18].mxu1 }
 0xbd5   :  { %v1358_v19 = vadd.f32 %v2382_v50, %v1357_v42  ;;  %v2036_v26 = vpop.f32.mrb[19].mxu1 }
 0xbd7   :  { %v1361_v43 = vadd.f32 %v1358_v19, %v1274_v39  ;;  %1744 = vst.msk [vmem:[%s2626_s11 + $0x30] sm:$0xff] %vm54_vm0, %v1358_v19 }
 0xbd9   :  { %1743 = vst.msk [vmem:[%s2627_s9 + $0x30] sm:$0xff] %vm54_vm0, %v1361_v43  ;;  %2046 = vmatmul.mubr.msk.f32.vlgmr.msra.gmra.mrb[16].mxu0 %vm54_vm0, %v1361_v43 }
 0xbda   :  { %2186 = vmatpush3.bf16.msra.mxu0 %v2183_v41  ;;  %2067 = vmatprep.mubr.msk.f32.mxu0 %vm54_vm0, %v1534_v45 }
 0xbdb   :  { %2188 = vmatprep.subr.bf16.mxu0 %v2187_v44 }
 0xbde   :  { %2190 = vmatpush3.bf16.msra.mxu0 %v2187_v44 }
 0xbe0   :  { %v1540_v52 = vld [vmem:[%s2627_s9 + $0x30] sm:$0xff] }
 0xbe1   :  { %2068 = vmatmul.mubr.msk.f32.vlgmr.msra.gmra.mrb[18].mxu0 %vm54_vm0, %v1535_v46 }
 0xbe2   :  { %2070 = vmatprep.mubr.msk.f32.mxu0 %vm54_vm0, %v1536_v47 }
 0xbe5   :  { %2071 = vmatmul.mubr.msk.f32.gmra.mrb[20].mxu0 %vm54_vm0, %v1537_v48 }
 0xbe6   :  { %2073 = vmatprep.mubr.msk.f32.mxu0 %vm54_vm0, %v1538_v49 }
 0xbe9   :  { %2074 = vmatmul.mubr.msk.f32.gmra.mrb[22].mxu0 %vm54_vm0, %v1539_v51 }
 0xbea   :  { %2076 = vmatprep.mubr.msk.f32.mxu0 %vm54_vm0, %v1540_v52 }
 0xcac   :  { %v1441_v54 = vpop.f32.mrb[16].mxu0 }
 0xcad   :  { %v1442_v55 = vadd.f32 %v1441_v54, %v1367_v53  ;;  %v2047_v56 = vpop.f32.mrb[17].mxu0 }
 0xcaf   :  { %2057 = vmatmul.mubr.msk.f32.vlgmr.msra.gmra.mrb[20].mxu1 %vm54_vm0, %v1442_v55 }
 0xcb4   :  { %v2069_v58 = vpop.f32.mrb[18].mxu0 }
 0xcb5   :  { %v1649_v59 = vadd.f32 %v2069_v58, %v1750_v57  ;;  %v1643_v60 = vpop.f32.mrb[19].mxu0 }
 0xcb6   :  { %v1644_v61 = vadd.f32 %v1750_v57, %v1643_v60 }
 0xcb7   :  { %1684 = vst.msk [vmem:[%s2630_s10 + $0x8] sm:$0xff] %vm1682_vm2, %v1649_v59 }
 0xcb8   :  { %1683 = vst.msk [vmem:[%s2630_s10] sm:$0xff] %vm1682_vm2, %v1644_v61  ;;  %v2072_v62 = vpop.f32.mrb[20].mxu0 }
 0xcb9   :  { %v1659_v63 = vadd.f32 %v2072_v62, %v1750_v57  ;;  %v1653_v0 = vpop.f32.mrb[21].mxu0 }
 0xcba   :  { %v1654_v1 = vadd.f32 %v1750_v57, %v1653_v0 }
 0xcbb   :  { %1686 = vst.msk [vmem:[%s2630_s10 + $0x18] sm:$0xff] %vm1682_vm2, %v1659_v63 }
 0xcbc   :  { %1685 = vst.msk [vmem:[%s2630_s10 + $0x10] sm:$0xff] %vm1682_vm2, %v1654_v1  ;;  %v2075_v2 = vpop.f32.mrb[22].mxu0 }
 0xcbd   :  { %v1669_v3 = vadd.f32 %v2075_v2, %v1750_v57  ;;  %v1663_v4 = vpop.f32.mrb[23].mxu0 }
 0xcbe   :  { %v1664_v5 = vadd.f32 %v1750_v57, %v1663_v4 }
 0xcbf   :  { %1688 = vst.msk [vmem:[%s2630_s10 + $0x28] sm:$0xff] %vm1682_vm2, %v1669_v3 }
 0xcc0   :  { %1687 = vst.msk [vmem:[%s2630_s10 + $0x20] sm:$0xff] %vm1682_vm2, %v1664_v5 }
 0xd82   :  { %v1525_v6 = vpop.f32.mrb[20].mxu1 }
 0xd83   :  { %v1526_v7 = vadd.f32 %v2382_v50, %v1525_v6  ;;  %v2058_v8 = vpop.f32.mrb[21].mxu1 }
 0xd85   :  { %v1529_v9 = vadd.f32 %v1526_v7, %v1442_v55  ;;  %1749 = vst.msk [vmem:[%s2626_s11 + $0x38] sm:$0xff] %vm54_vm0, %v1526_v7 }
 0xd87   :  { %1748 = vst.msk [vmem:[%s2627_s9 + $0x38] sm:$0xff] %vm54_vm0, %v1529_v9 }
 0xd8e   :  { %v1541_v10 = vld [vmem:[%s2627_s9 + $0x38] sm:$0xff] }
 0xd8f   :  { %2077 = vmatmul.mubr.msk.f32.gmra.mrb[24].mxu0 %vm54_vm0, %v1541_v10 }
 0xe62   :  { %v2078_v11 = vpop.f32.mrb[24].mxu0 }
 0xe63   :  { %v1679_v50 = vadd.f32 %v2078_v11, %v1750_v57  ;;  %v1673_v14 = vpop.f32.mrb[25].mxu0 }
 0xe64   :  { %v1674_v15 = vadd.f32 %v1750_v57, %v1673_v14 }
 0xe65   :  { %1690 = vst.msk [vmem:[%s2630_s10 + $0x38] sm:$0xff] %vm1682_vm2, %v1679_v50 }
 0xe66   :  { %1689 = vst.msk [vmem:[%s2630_s10 + $0x30] sm:$0xff] %vm1682_vm2, %v1674_v15 }

</bundles_post_ra>
